<compile_context>
chip_gen: v5e
topology: v5e:2x2
jax: 0.10.0
libtpu: 0.0.40
codegen_flags: <defaults>
</compile_context>

<pallas_src>
import functools

import jax
import jax.numpy as jnp
import numpy as np
from jax.experimental import pallas as pl
from jax.experimental.pallas import tpu as pltpu


def _round_up(x, m):
    return ((x + m - 1) // m) * m


@functools.lru_cache(maxsize=None)
def _num_tensorcores():
    """Heuristic: only v7x has 2 TensorCores sharing the 'parallel' grid axis."""
    try:
        kind = (jax.devices()[0].device_kind or "").lower()
        if "v7" in kind or "7x" in kind:
            return 2
    except Exception:
        pass
    return 1


@functools.lru_cache(maxsize=None)
def _vmem_budget_and_limit():
    """(tile-picking budget, vmem_limit_bytes), per TensorCore, generation-aware."""
    cap = None
    try:
        cap = int(pltpu.get_tpu_info().vmem_capacity_bytes)
    except Exception:
        cap = None
    if not cap or cap <= 0:
        cap = 64 * 1024 * 1024          # conservative fallback (v7x per-TC size)
    if _num_tensorcores() >= 2 and cap > 64 * 1024 * 1024:
        cap = cap // _num_tensorcores()  # treat reported capacity as per-chip
    return int(cap * 0.70), int(cap * 0.85)


def _footprint_bytes(tile, k_aug_p, n_legs_p, n_votes_p, theta_ik, beta_ik, elt):
    """VMEM estimate incl. pipeline buffer counts and in-kernel temporaries."""
    onehot_rows = (n_legs_p if theta_ik else 0) + (n_votes_p if beta_ik else 0)
    f = 0
    # int32 index streams, double buffered (one per in-kernel-gathered table).
    f += 2 * tile * 4 * (int(theta_ik) + int(beta_ik))
    # f32 output stream, double buffered.
    f += 2 * tile * 4
    # pre-gathered streams, double buffered (one per externally gathered table).
    f += 2 * k_aug_p * tile * elt * (int(not theta_ik) + int(not beta_ik))
    # resident augmented table(s), SINGLE buffered (pl.Buffered(1)).
    if theta_ik and beta_ik:
        f += 2 * k_aug_p * (n_legs_p + n_votes_p) * elt   # fused block-diagonal
    else:
        f += k_aug_p * onehot_rows * elt
    # in-kernel temporaries: one-hot, iota + predicates, gathered slabs, product.
    f += onehot_rows * tile * elt
    f += onehot_rows * tile * 8
    f += 2 * k_aug_p * tile * 4
    f += k_aug_p * tile * 4
    return f


def _choose_mode_and_tile(n, k_aug_p, n_legs_p, n_votes_p, requested_tile,
                          onehot_row_cap, elt, budget, num_cores, force_mode):
    if force_mode == "onehot":
        theta_ik, beta_ik = True, True
    elif force_mode == "hybrid":
        theta_ik, beta_ik = (n_legs_p <= n_votes_p), (n_votes_p < n_legs_p)
    elif force_mode == "pregather":
        theta_ik, beta_ik = False, False
    else:
        theta_ik = n_legs_p <= onehot_row_cap
        beta_ik = n_votes_p <= onehot_row_cap
        # Demote (pre-gather the larger table) while even the 128-wide tile
        # does not fit the per-core VMEM budget.
        while (theta_ik or beta_ik) and _footprint_bytes(
                128, k_aug_p, n_legs_p, n_votes_p, theta_ik, beta_ik, elt) > budget:
            if theta_ik and beta_ik:
                if n_votes_p >= n_legs_p:
                    beta_ik = False
                else:
                    theta_ik = False
            elif beta_ik:
                beta_ik = False
            else:
                theta_ik = False

    if _footprint_bytes(128, k_aug_p, n_legs_p, n_votes_p,
                        theta_ik, beta_ik, elt) > budget:
        raise ValueError(
            "cf_baseline Pallas kernel does not fit the VMEM budget "
            f"({budget} bytes) even at TILE=128 with mode "
            f"(theta_in_kernel={theta_ik}, beta_in_kernel={beta_ik}).")

    tile = max(128, (int(requested_tile) // 128) * 128)
    tile = min(tile, _round_up(n, 128))            # no point in a mostly-pad tile
    if num_cores >= 2:
        # Keep >= ~4*num_cores grid steps so the "parallel" axis feeds every TC.
        tile = min(tile, max(128, _round_up(-(-n // (4 * num_cores)), 128)))
    while tile > 128 and _footprint_bytes(tile, k_aug_p, n_legs_p, n_votes_p,
                                          theta_ik, beta_ik, elt) > budget:
        tile -= 128
    return theta_ik, beta_ik, tile


# ----------------------------------------------------------------------------- kernels


def _cf_kernel_fused(legs_ref, votes_ref, table_ref, o_ref):
    # legs_ref  : (1, TILE) int32  -- legislator ids
    # votes_ref : (1, TILE) int32  -- vote ids, PRE-OFFSET by n_legs_p in the wrapper
    # table_ref : (2*K_AUG, L+V)   -- block-diag augmented table (resident, 1 buffer)
    # o_ref     : (1, TILE) f32
    rows = table_ref.shape[1]
    k_aug = table_ref.shape[0] // 2
    tile = legs_ref.shape[1]
    dt = table_ref.dtype

    # Single "two-hot" matrix: column t has a 1 at row legs[t] (theta block) and a
    # 1 at row n_legs_p + votes[t] (beta block).  The block-diagonal table keeps
    # the two hits from polluting each other, so ONE MXU matmul gathers both.
    iota = jax.lax.broadcasted_iota(jnp.int32, (rows, tile), 0)
    two_hot = ((iota == legs_ref[...]) | (iota == votes_ref[...])).astype(dt)

    g = jnp.dot(table_ref[...], two_hot, preferred_element_type=jnp.float32)
    # Contraction over the augmented k dim: VPU multiply + sublane reduce (no MXU).
    o_ref[...] = jnp.sum(g[:k_aug, :] * g[k_aug:, :], axis=0, keepdims=True)


def _cf_kernel_hybrid(idx_ref, big_ref, table_ref, o_ref):
    # idx_ref  : (1, TILE) int32   -- indices into the small resident table
    # big_ref  : (K_AUG, TILE)     -- pre-gathered slices of the large table (streamed)
    # table_ref: (K_AUG, S)        -- small augmented table (resident, 1 buffer)
    # o_ref    : (1, TILE) f32
    s_rows = table_ref.shape[1]
    tile = idx_ref.shape[1]
    dt = table_ref.dtype

    iota = jax.lax.broadcasted_iota(jnp.int32, (s_rows, tile), 0)
    one_hot = (iota == idx_ref[...]).astype(dt)
    small_g = jnp.dot(table_ref[...], one_hot, preferred_element_type=jnp.float32)
    o_ref[...] = jnp.sum(small_g * big_ref[...].astype(jnp.float32),
                         axis=0, keepdims=True)


def _cf_kernel_pregather(theta_g_ref, beta_g_ref, o_ref):
    # theta_g_ref / beta_g_ref : (K_AUG, TILE) pre-gathered slices (streamed)
    o_ref[...] = jnp.sum(theta_g_ref[...].astype(jnp.float32) *
                         beta_g_ref[...].astype(jnp.float32),
                         axis=0, keepdims=True)


# ----------------------------------------------------------------------------- wrapper


@functools.partial(jax.jit, static_argnames=("tile", "onehot_row_cap",
                                              "use_bf16_gather", "force_mode"))
def cf_baseline_forward(theta, beta, theta_mean, beta_mean, overall_mean,
                        legs, votes, *, tile=8192, onehot_row_cap=2048,
                        use_bf16_gather=False, force_mode=None):
    """theta:(n_legs,k)  beta:(n_votes,k)  legs/votes:(N,) int  -> (N,) f32."""
    n_legs, k_dim = theta.shape
    n_votes = beta.shape[0]
    n = legs.shape[0]

    k_aug = k_dim + 3                       # [embedding | own bias | ones | overall_mean]
    k_aug_p = _round_up(k_aug, 8)           # sublane alignment
    n_legs_p = _round_up(n_legs, 128)       # lane alignment for the tables
    n_votes_p = _round_up(n_votes, 128)

    tdt = jnp.bfloat16 if use_bf16_gather else jnp.float32
    elt = 2 if use_bf16_gather else 4
    budget, vmem_limit = _vmem_budget_and_limit()
    num_cores = _num_tensorcores()

    theta_ik, beta_ik, tile = _choose_mode_and_tile(
        n, k_aug_p, n_legs_p, n_votes_p, tile, onehot_row_cap,
        elt, budget, num_cores, force_mode)

    n_pad = _round_up(n, tile)
    # Pad the cheap int32 INDEX vectors (0 is a valid index; tail sliced off below).
    legs_i = jnp.pad(legs.astype(jnp.int32), (0, n_pad - n))
    votes_i = jnp.pad(votes.astype(jnp.int32), (0, n_pad - n))

    # Augmented tables; zero-padded rows/cols contribute 0 and are never selected.
    theta_aug = jnp.zeros((k_aug_p, n_legs_p), tdt)
    theta_aug = theta_aug.at[:k_dim, :n_legs].set(theta.T.astype(tdt))
    theta_aug = theta_aug.at[k_dim, :n_legs].set(theta_mean.astype(tdt))
    theta_aug = theta_aug.at[k_dim + 1, :n_legs].set(jnp.asarray(1.0, tdt))
    theta_aug = theta_aug.at[k_dim + 2, :n_legs].set(overall_mean.astype(tdt)[0])

    beta_aug = jnp.zeros((k_aug_p, n_votes_p), tdt)
    beta_aug = beta_aug.at[:k_dim, :n_votes].set(beta.T.astype(tdt))
    beta_aug = beta_aug.at[k_dim, :n_votes].set(jnp.asarray(1.0, tdt))
    beta_aug = beta_aug.at[k_dim + 1, :n_votes].set(beta_mean.astype(tdt))
    beta_aug = beta_aug.at[k_dim + 2, :n_votes].set(jnp.asarray(1.0, tdt))

    grid = (n_pad // tile,)
    out_shape = jax.ShapeDtypeStruct((1, n_pad), jnp.float32)
    cparams = pltpu.CompilerParams(dimension_semantics=("parallel",),
                                   vmem_limit_bytes=vmem_limit)

    if theta_ik and beta_ik:
        # Fused block-diagonal table: theta top-left, beta bottom-right.
        fused = jnp.zeros((2 * k_aug_p, n_legs_p + n_votes_p), tdt)
        fused = fused.at[:k_aug_p, :n_legs_p].set(theta_aug)
        fused = fused.at[k_aug_p:, n_legs_p:].set(beta_aug)
        votes_off = (votes_i + n_legs_p).reshape(1, n_pad)   # offset into beta block
        out = pl.pallas_call(
            _cf_kernel_fused,
            out_shape=out_shape,
            grid_spec=pltpu.PrefetchScalarGridSpec(
                num_scalar_prefetch=0,
                grid=grid,
                in_specs=[
                    pl.BlockSpec((1, tile), lambda i: (0, i)),            # leg ids
                    pl.BlockSpec((1, tile), lambda i: (0, i)),            # vote ids (+offset)
                    pl.BlockSpec((2 * k_aug_p, n_legs_p + n_votes_p),
                                 lambda i: (0, 0),
                                 pipeline_mode=pl.Buffered(1)),           # resident table
                ],
                out_specs=pl.BlockSpec((1, tile), lambda i: (0, i)),
            ),
            compiler_params=cparams,
        )(legs_i.reshape(1, n_pad), votes_off, fused)
    elif theta_ik or beta_ik:
        # Hybrid: small table gathered in-kernel, large table pre-gathered by XLA.
        if theta_ik:
            small_idx, small_tab = legs_i, theta_aug
            big_g = jnp.take(beta_aug, votes_i, axis=1)        # (k_aug_p, n_pad)
        else:
            small_idx, small_tab = votes_i, beta_aug
            big_g = jnp.take(theta_aug, legs_i, axis=1)
        out = pl.pallas_call(
            _cf_kernel_hybrid,
            out_shape=out_shape,
            grid_spec=pltpu.PrefetchScalarGridSpec(
                num_scalar_prefetch=0,
                grid=grid,
                in_specs=[
                    pl.BlockSpec((1, tile), lambda i: (0, i)),            # small-table ids
                    pl.BlockSpec((k_aug_p, tile), lambda i: (0, i)),      # pre-gathered stream
                    pl.BlockSpec(small_tab.shape, lambda i: (0, 0),
                                 pipeline_mode=pl.Buffered(1)),           # resident table
                ],
                out_specs=pl.BlockSpec((1, tile), lambda i: (0, i)),
            ),
            compiler_params=cparams,
        )(small_idx.reshape(1, n_pad), big_g, small_tab)
    else:
        # Both tables huge: pre-gather both, kernel is multiply + sublane reduce.
        theta_g = jnp.take(theta_aug, legs_i, axis=1)
        beta_g = jnp.take(beta_aug, votes_i, axis=1)
        out = pl.pallas_call(
            _cf_kernel_pregather,
            out_shape=out_shape,
            grid_spec=pltpu.PrefetchScalarGridSpec(
                num_scalar_prefetch=0,
                grid=grid,
                in_specs=[
                    pl.BlockSpec((k_aug_p, tile), lambda i: (0, i)),
                    pl.BlockSpec((k_aug_p, tile), lambda i: (0, i)),
                ],
                out_specs=pl.BlockSpec((1, tile), lambda i: (0, i)),
            ),
            compiler_params=cparams,
        )(theta_g, beta_g)

    return out[0, :n]


if __name__ == "__main__":
    # Small deterministic problem: n_legs=6, n_votes=10, k_dim=2, N=300 observations.
    k_dim = 2
    n_legs = 6
    n_votes = 10
    n_obs = 300

    key = jax.random.PRNGKey(0)
    k1, k2, k3, k4, k5, k6 = jax.random.split(key, 6)

    theta = jax.random.normal(k1, (n_legs, k_dim), dtype=jnp.float32)
    beta = jax.random.normal(k2, (n_votes, k_dim), dtype=jnp.float32)
    theta_mean = jax.random.normal(k3, (n_legs,), dtype=jnp.float32)
    beta_mean = jax.random.normal(k4, (n_votes,), dtype=jnp.float32)
    overall_mean = jnp.zeros((1,), dtype=jnp.float32)

    legs = jax.random.randint(k5, (n_obs,), 0, n_legs, dtype=jnp.int32)
    votes = jax.random.randint(k6, (n_obs,), 0, n_votes, dtype=jnp.int32)

    # Pure-JAX reference.
    ref = np.asarray(jnp.sum(theta[legs] * beta[votes], axis=1)
                     + theta_mean[legs] + beta_mean[votes] + overall_mean)

    # Default path (fused in-kernel one-hot gather; tables are tiny) — exact f32.
    out = jax.block_until_ready(
        cf_baseline_forward(theta, beta, theta_mean, beta_mean, overall_mean,
                            legs, votes))
    np.testing.assert_allclose(np.asarray(out), ref, rtol=1e-5, atol=1e-5)

    # Exercise the large-table paths too (hybrid pre-gather / both pre-gathered).
    for mode in ("hybrid", "pregather"):
        o = jax.block_until_ready(
            cf_baseline_forward(theta, beta, theta_mean, beta_mean, overall_mean,
                                legs, votes, force_mode=mode))
        np.testing.assert_allclose(np.asarray(o), ref, rtol=1e-5, atol=1e-5)

    # Optional bf16 gather path: exact 0/1 gather, but table values are rounded to
    # bf16, so only a smoke-level tolerance applies.
    o16 = jax.block_until_ready(
        cf_baseline_forward(theta, beta, theta_mean, beta_mean, overall_mean,
                            legs, votes, use_bf16_gather=True))
    np.testing.assert_allclose(np.asarray(o16), ref, rtol=1e-1, atol=1e-1)

    print("KERNEL_OK")
</pallas_src>

<mosaic_0001>
module attributes {stable_mosaic.version = 11 : i64} {
  func.func @_cf_kernel_fused(%arg0: i32, %arg1: memref<1x384xi32, #tpu.memory_space<vmem>>, %arg2: memref<1x384xi32, #tpu.memory_space<vmem>>, %arg3: memref<16x256xf32, #tpu.memory_space<vmem>>, %arg4: memref<1x384xf32, #tpu.memory_space<vmem>>) attributes {dimension_semantics = [#tpu.dimension_semantics<parallel>], iteration_bounds = array<i64: 1>, scalar_prefetch = 0 : i64, scratch_operands = 0 : i64, tpu.core_type = #tpu.core_type<tc>, window_params = [{transform_indices = @transform_0, window_bounds = array<i64: 1, 384>}, {transform_indices = @transform_1, window_bounds = array<i64: 1, 384>}, {pipeline_mode = #tpu.pipeline_mode<synchronous>, transform_indices = @transform_2, window_bounds = array<i64: 16, 256>}, {transform_indices = @transform_3, window_bounds = array<i64: 1, 384>}]} {
    %0 = tpu.iota {dimensions = array<i32: 0>} : vector<256x384xi32>
    %c0 = arith.constant 0 : index
    %c0_0 = arith.constant 0 : index
    %1 = vector.load %arg1[%c0, %c0_0] : memref<1x384xi32, #tpu.memory_space<vmem>>, vector<1x384xi32>
    %2 = vector.broadcast %1 : vector<1x384xi32> to vector<256x384xi32>
    %3 = arith.cmpi eq, %0, %2 : vector<256x384xi32>
    %c0_1 = arith.constant 0 : index
    %c0_2 = arith.constant 0 : index
    %4 = vector.load %arg2[%c0_1, %c0_2] : memref<1x384xi32, #tpu.memory_space<vmem>>, vector<1x384xi32>
    %5 = vector.broadcast %4 : vector<1x384xi32> to vector<256x384xi32>
    %6 = arith.cmpi eq, %0, %5 : vector<256x384xi32>
    %7 = arith.ori %3, %6 : vector<256x384xi1>
    %8 = arith.extui %7 : vector<256x384xi1> to vector<256x384xi32>
    %9 = arith.sitofp %8 : vector<256x384xi32> to vector<256x384xf32>
    %c0_3 = arith.constant 0 : index
    %c0_4 = arith.constant 0 : index
    %10 = vector.load %arg3[%c0_3, %c0_4] : memref<16x256xf32, #tpu.memory_space<vmem>>, vector<16x256xf32>
    %cst = arith.constant dense<0.000000e+00> : vector<16x384xf32>
    %11 = tpu.matmul %10, %9, %cst {dimension_numbers = #tpu.dot_dimension_numbers<[1], [0], [0], [1], [0, 0, 1, 1], [], []>} : vector<16x256xf32>, vector<256x384xf32>, vector<16x384xf32> -> vector<16x384xf32>
    %12 = vector.extract_strided_slice %11 {offsets = [0, 0], sizes = [8, 384], strides = [1, 1]} : vector<16x384xf32> to vector<8x384xf32>
    %13 = vector.extract_strided_slice %11 {offsets = [8, 0], sizes = [8, 384], strides = [1, 1]} : vector<16x384xf32> to vector<8x384xf32>
    %14 = arith.mulf %12, %13 : vector<8x384xf32>
    %cst_5 = arith.constant dense<0.000000e+00> : vector<384xf32>
    %15 = vector.multi_reduction <add>, %14, %cst_5 [0] : vector<8x384xf32> to vector<384xf32>
    %16 = vector.shape_cast %15 : vector<384xf32> to vector<1x384xf32>
    %c0_6 = arith.constant 0 : index
    %c0_7 = arith.constant 0 : index
    %17 = vector.load %arg4[%c0_6, %c0_7] : memref<1x384xf32, #tpu.memory_space<vmem>>, vector<1x384xf32>
    tpu.vector_store %arg4[%c0_6, %c0_7], %16 {strides = array<i32>} : memref<1x384xf32, #tpu.memory_space<vmem>>, vector<1x384xf32>,
    return
  }
  func.func @transform_0(%arg0: i32) -> (i32, i32) {
    %c0_i32 = arith.constant 0 : i32
    %c0_i32_0 = arith.constant 0 : i32
    return %c0_i32, %arg0 : i32, i32
  }
  func.func @transform_1(%arg0: i32) -> (i32, i32) {
    %c0_i32 = arith.constant 0 : i32
    %c0_i32_0 = arith.constant 0 : i32
    return %c0_i32, %arg0 : i32, i32
  }
  func.func @transform_2(%arg0: i32) -> (i32, i32) {
    %c0_i32 = arith.constant 0 : i32
    %c0_i32_0 = arith.constant 0 : i32
    %c0_i32_1 = arith.constant 0 : i32
    return %c0_i32, %c0_i32_0 : i32, i32
  }
  func.func @transform_3(%arg0: i32) -> (i32, i32) {
    %c0_i32 = arith.constant 0 : i32
    %c0_i32_0 = arith.constant 0 : i32
    return %c0_i32, %arg0 : i32, i32
  }
}

</mosaic_0001>

<bundles_post_ra>
// kernel: cf_baseline_forward.1
= control target key start
LH: loop header
LB: loop body
LE: loop exit
PB: predicated region body
PF: predicated region fallthrough
CT: control target
= control target key end

     0   :  { %v14_v0 = vlaneseq  ;;  %v942_v14 = vmov 1.0   ;;  %v1898_v47 = vmov 0  ;;  %v1900_v50 = vmov 0  ;;  %s1878_s0 = inlined_call_operand.vmem [shape: s32[1,384], index: 0, kind: input, shape index: {}]   ;;  %s1879_s1 = inlined_call_operand.vmem [shape: s32[1,384], index: 1, kind: input, shape index: {}]   ;;  %s1880_s2 = inlined_call_operand.vmem [shape: f32[16,256], index: 2, kind: input, shape index: {}]   ;;  %s1881_s3 = inlined_call_operand.vmem [shape: f32[1,384], index: 3, kind: output, shape index: {}]  }
   0x1   :  { %v966_v1 = vld [vmem:[%s1878_s0] sm:$0x7]  ;;  %v1390_v43 = vld [vmem:[%s1880_s2 + $0x8] sm:$0xff]  ;;  %v1458_v48 = vld [vmem:[%s1880_s2 + $0x10] sm:$0xff]  ;;  %v1908_v54 = vmov 0  ;;  %v1918_v58 = vmov 0 }
   0x2   :  { %v971_v2 = vld [vmem:[%s1879_s1] sm:$0x7]  ;;  %v974_v3 = vshrl.u32 %v14_v0, 7  ;;  %v977_v4 = vperm.slane %v966_v1, 1  ;;  %v1001_v12 = vperm.slane %v966_v1, 0  ;;  %v1353_v40 = vperm.slane %v966_v1, 2 }
   0x3   :  { %v980_v5 = vperm.slane %v971_v2, 1  ;;  %v1004_v13 = vperm.slane %v971_v2, 0  ;;  %v1356_v41 = vperm.slane %v971_v2, 2  ;;  %v1380_v42 = vld [vmem:[%s1880_s2] sm:$0xff]  ;;  %v1470_v49 = vld [vmem:[%s1880_s2 + $0x18] sm:$0xff]  ;;  %v1925_v61 = vmov 0 }
   0x4   :  { %v983_v6 = vadd.s32 120, %v974_v3  ;;  %v986_v7 = vadd.s32 248, %v974_v3  ;;  %v989_v8 = vadd.s32 112, %v974_v3  ;;  %v992_v9 = vadd.s32 240, %v974_v3 }
   0x5   :  { %v995_v10 = vadd.s32 104, %v974_v3  ;;  %v998_v11 = vadd.s32 232, %v974_v3  ;;  %v1028_v15 = vadd.s32 96, %v974_v3  ;;  %v1036_v16 = vadd.s32 224, %v974_v3 }
   0x6   :  { %vm97_vm0 = vcmp.eq.s32.totalorder %v983_v6, %v977_v4  ;;  %vm197_vm1 = vcmp.eq.s32.totalorder %v983_v6, %v980_v5  ;;  %vm145_vm2 = vcmp.eq.s32.totalorder %v986_v7, %v977_v4  ;;  %vm245_vm3 = vcmp.eq.s32.totalorder %v986_v7, %v980_v5 }
   0x7   :  { %vm293_vm4 = vmor %vm97_vm0, %vm197_vm1  ;;  %vm94_vm5 = vcmp.eq.s32.totalorder %v989_v8, %v977_v4  ;;  %vm194_vm6 = vcmp.eq.s32.totalorder %v989_v8, %v980_v5  ;;  %vm142_vm7 = vcmp.eq.s32.totalorder %v992_v9, %v977_v4  ;;  %vm242_vm8 = vcmp.eq.s32.totalorder %v992_v9, %v980_v5 }
   0x8   :  { %845 = vmatpush.msk.msra.mxu2 %vm293_vm4, %v942_v14  ;;  %vm341_vm9 = vmor %vm145_vm2, %vm245_vm3  ;;  %vm91_vm10 = vcmp.eq.s32.totalorder %v995_v10, %v977_v4  ;;  %vm191_vm11 = vcmp.eq.s32.totalorder %v995_v10, %v980_v5  ;;  %vm139_vm13 = vcmp.eq.s32.totalorder %v998_v11, %v977_v4  ;;  %vm239_vm14 = vcmp.eq.s32.totalorder %v998_v11, %v980_v5 }
   0x9   :  { %861 = vmatpush.msk.msra.mxu3 %vm341_vm9, %v942_v14  ;;  %vm290_vm12 = vmor %vm94_vm5, %vm194_vm6  ;;  %vm96_vm0 = vcmp.eq.s32.totalorder %v983_v6, %v1001_v12  ;;  %vm196_vm1 = vcmp.eq.s32.totalorder %v983_v6, %v1004_v13  ;;  %vm144_vm3 = vcmp.eq.s32.totalorder %v986_v7, %v1001_v12  ;;  %vm244_vm4 = vcmp.eq.s32.totalorder %v986_v7, %v1004_v13 }
   0xa   :  { %846 = vmatpush.msk.msra.mxu2 %vm290_vm12, %v942_v14  ;;  %vm338_vm15 = vmor %vm142_vm7, %vm242_vm8  ;;  %vm88_vm6 = vcmp.eq.s32.totalorder %v1028_v15, %v977_v4  ;;  %vm188_vm7 = vcmp.eq.s32.totalorder %v1028_v15, %v980_v5  ;;  %v1054_v17 = vadd.s32 88, %v974_v3  ;;  %vm136_vm9 = vcmp.eq.s32.totalorder %v1036_v16, %v977_v4 }
   0xb   :  { %862 = vmatpush.msk.msra.mxu3 %vm338_vm15, %v942_v14  ;;  %vm287_vm2 = vmor %vm91_vm10, %vm191_vm11  ;;  %vm236_vm10 = vcmp.eq.s32.totalorder %v1036_v16, %v980_v5  ;;  %v1062_v18 = vadd.s32 216, %v974_v3  ;;  %vm93_vm12 = vcmp.eq.s32.totalorder %v989_v8, %v1001_v12  ;;  %vm141_vm15 = vcmp.eq.s32.totalorder %v992_v9, %v1001_v12 }
   0xc   :  { %847 = vmatpush.msk.msra.mxu2 %vm287_vm2, %v942_v14  ;;  %vm335_vm5 = vmor %vm139_vm13, %vm239_vm14  ;;  %vm193_vm13 = vcmp.eq.s32.totalorder %v989_v8, %v1004_v13  ;;  %vm85_vm2 = vcmp.eq.s32.totalorder %v1054_v17, %v977_v4  ;;  %v1080_v19 = vadd.s32 80, %v974_v3  ;;  %v1088_v20 = vadd.s32 208, %v974_v3 }
   0xd   :  { %863 = vmatpush.msk.msra.mxu3 %vm335_vm5, %v942_v14  ;;  %vm292_vm8 = vmor %vm96_vm0, %vm196_vm1  ;;  %vm241_vm0 = vcmp.eq.s32.totalorder %v992_v9, %v1004_v13  ;;  %vm133_vm5 = vcmp.eq.s32.totalorder %v1062_v18, %v977_v4  ;;  %v1106_v21 = vadd.s32 72, %v974_v3  ;;  %v1114_v22 = vadd.s32 200, %v974_v3 }
   0xe   :  { %813 = vmatpush.msk.msra.mxu0 %vm292_vm8, %v942_v14  ;;  %vm340_vm11 = vmor %vm144_vm3, %vm244_vm4  ;;  %vm185_vm3 = vcmp.eq.s32.totalorder %v1054_v17, %v980_v5  ;;  %vm90_vm8 = vcmp.eq.s32.totalorder %v995_v10, %v1001_v12  ;;  %v1132_v23 = vadd.s32 64, %v974_v3  ;;  %v1140_v24 = vadd.s32 192, %v974_v3 }
   0xf   :  { %829 = vmatpush.msk.msra.mxu1 %vm340_vm11, %v942_v14  ;;  %vm284_vm14 = vmor %vm88_vm6, %vm188_vm7  ;;  %vm233_vm6 = vcmp.eq.s32.totalorder %v1062_v18, %v980_v5  ;;  %vm138_vm11 = vcmp.eq.s32.totalorder %v998_v11, %v1001_v12  ;;  %v1158_v25 = vadd.s32 56, %v974_v3  ;;  %v1166_v26 = vadd.s32 184, %v974_v3 }
  0x10   :  { %848 = vmatpush.msk.msra.mxu2 %vm284_vm14, %v942_v14  ;;  %vm332_vm1 = vmor %vm136_vm9, %vm236_vm10  ;;  %vm190_vm9 = vcmp.eq.s32.totalorder %v995_v10, %v1004_v13  ;;  %vm82_vm14 = vcmp.eq.s32.totalorder %v1080_v19, %v977_v4  ;;  %v1184_v27 = vadd.s32 48, %v974_v3  ;;  %v1192_v28 = vadd.s32 176, %v974_v3 }
  0x11   :  { %864 = vmatpush.msk.msra.mxu3 %vm332_vm1, %v942_v14  ;;  %vm289_vm4 = vmor %vm93_vm12, %vm193_vm13  ;;  %vm238_vm12 = vcmp.eq.s32.totalorder %v998_v11, %v1004_v13  ;;  %vm130_vm1 = vcmp.eq.s32.totalorder %v1088_v20, %v977_v4  ;;  %v1210_v29 = vadd.s32 40, %v974_v3  ;;  %v1218_v30 = vadd.s32 168, %v974_v3 }
  0x12   :  { %814 = vmatpush.msk.msra.mxu0 %vm289_vm4, %v942_v14  ;;  %vm337_vm7 = vmor %vm141_vm15, %vm241_vm0  ;;  %vm182_vm15 = vcmp.eq.s32.totalorder %v1080_v19, %v980_v5  ;;  %vm87_vm4 = vcmp.eq.s32.totalorder %v1028_v15, %v1001_v12  ;;  %v1236_v31 = vadd.s32 32, %v974_v3  ;;  %v1244_v32 = vadd.s32 160, %v974_v3 }
  0x13   :  { %830 = vmatpush.msk.msra.mxu1 %vm337_vm7, %v942_v14  ;;  %vm281_vm10 = vmor %vm85_vm2, %vm185_vm3  ;;  %vm230_vm2 = vcmp.eq.s32.totalorder %v1088_v20, %v980_v5  ;;  %vm135_vm7 = vcmp.eq.s32.totalorder %v1036_v16, %v1001_v12  ;;  %v1262_v33 = vadd.s32 24, %v974_v3  ;;  %v1270_v34 = vadd.s32 152, %v974_v3 }
  0x14   :  { %849 = vmatpush.msk.msra.mxu2 %vm281_vm10, %v942_v14  ;;  %vm329_vm13 = vmor %vm133_vm5, %vm233_vm6  ;;  %vm187_vm5 = vcmp.eq.s32.totalorder %v1028_v15, %v1004_v13  ;;  %vm79_vm10 = vcmp.eq.s32.totalorder %v1106_v21, %v977_v4  ;;  %v1288_v35 = vadd.s32 16, %v974_v3  ;;  %v1296_v36 = vadd.s32 144, %v974_v3 }
  0x15   :  { %865 = vmatpush.msk.msra.mxu3 %vm329_vm13, %v942_v14  ;;  %vm286_vm0 = vmor %vm90_vm8, %vm190_vm9  ;;  %vm235_vm8 = vcmp.eq.s32.totalorder %v1036_v16, %v1004_v13  ;;  %vm127_vm13 = vcmp.eq.s32.totalorder %v1114_v22, %v977_v4  ;;  %v1314_v37 = vadd.s32 8, %v974_v3  ;;  %v1322_v38 = vadd.s32 136, %v974_v3 }
  0x16   :  { %815 = vmatpush.msk.msra.mxu0 %vm286_vm0, %v942_v14  ;;  %vm334_vm3 = vmor %vm138_vm11, %vm238_vm12  ;;  %vm179_vm11 = vcmp.eq.s32.totalorder %v1106_v21, %v980_v5  ;;  %vm84_vm0 = vcmp.eq.s32.totalorder %v1054_v17, %v1001_v12  ;;  %v1345_v39 = vadd.s32 128, %v974_v3  ;;  %v1927_v62 = vmov 0 }
  0x17   :  { %831 = vmatpush.msk.msra.mxu1 %vm334_vm3, %v942_v14  ;;  %vm278_vm6 = vmor %vm82_vm14, %vm182_vm15  ;;  %vm227_vm14 = vcmp.eq.s32.totalorder %v1114_v22, %v980_v5  ;;  %vm132_vm3 = vcmp.eq.s32.totalorder %v1062_v18, %v1001_v12  ;;  %v1933_v2 = vmov 0 }
  0x18   :  { %850 = vmatpush.msk.msra.mxu2 %vm278_vm6, %v942_v14  ;;  %vm326_vm9 = vmor %vm130_vm1, %vm230_vm2  ;;  %vm184_vm1 = vcmp.eq.s32.totalorder %v1054_v17, %v1004_v13  ;;  %vm76_vm6 = vcmp.eq.s32.totalorder %v1132_v23, %v977_v4 }
  0x19   :  { %866 = vmatpush.msk.msra.mxu3 %vm326_vm9, %v942_v14  ;;  %vm283_vm12 = vmor %vm87_vm4, %vm187_vm5  ;;  %vm232_vm4 = vcmp.eq.s32.totalorder %v1062_v18, %v1004_v13  ;;  %vm124_vm9 = vcmp.eq.s32.totalorder %v1140_v24, %v977_v4 }
  0x1a   :  { %816 = vmatpush.msk.msra.mxu0 %vm283_vm12, %v942_v14  ;;  %vm331_vm15 = vmor %vm135_vm7, %vm235_vm8  ;;  %vm176_vm7 = vcmp.eq.s32.totalorder %v1132_v23, %v980_v5  ;;  %vm81_vm12 = vcmp.eq.s32.totalorder %v1080_v19, %v1001_v12 }
  0x1b   :  { %832 = vmatpush.msk.msra.mxu1 %vm331_vm15, %v942_v14  ;;  %vm275_vm2 = vmor %vm79_vm10, %vm179_vm11  ;;  %vm224_vm10 = vcmp.eq.s32.totalorder %v1140_v24, %v980_v5  ;;  %vm129_vm15 = vcmp.eq.s32.totalorder %v1088_v20, %v1001_v12 }
  0x1c   :  { %851 = vmatpush.msk.msra.mxu2 %vm275_vm2, %v942_v14  ;;  %vm323_vm5 = vmor %vm127_vm13, %vm227_vm14  ;;  %vm181_vm13 = vcmp.eq.s32.totalorder %v1080_v19, %v1004_v13  ;;  %vm73_vm2 = vcmp.eq.s32.totalorder %v1158_v25, %v977_v4 }
  0x1d   :  { %867 = vmatpush.msk.msra.mxu3 %vm323_vm5, %v942_v14  ;;  %vm280_vm8 = vmor %vm84_vm0, %vm184_vm1  ;;  %vm229_vm0 = vcmp.eq.s32.totalorder %v1088_v20, %v1004_v13  ;;  %vm121_vm5 = vcmp.eq.s32.totalorder %v1166_v26, %v977_v4 }
  0x1e   :  { %817 = vmatpush.msk.msra.mxu0 %vm280_vm8, %v942_v14  ;;  %vm328_vm11 = vmor %vm132_vm3, %vm232_vm4  ;;  %vm173_vm3 = vcmp.eq.s32.totalorder %v1158_v25, %v980_v5  ;;  %vm78_vm8 = vcmp.eq.s32.totalorder %v1106_v21, %v1001_v12 }
  0x1f   :  { %833 = vmatpush.msk.msra.mxu1 %vm328_vm11, %v942_v14  ;;  %vm272_vm14 = vmor %vm76_vm6, %vm176_vm7  ;;  %vm221_vm6 = vcmp.eq.s32.totalorder %v1166_v26, %v980_v5  ;;  %vm126_vm11 = vcmp.eq.s32.totalorder %v1114_v22, %v1001_v12 }
  0x20   :  { %852 = vmatpush.msk.msra.mxu2 %vm272_vm14, %v942_v14  ;;  %vm320_vm1 = vmor %vm124_vm9, %vm224_vm10  ;;  %vm178_vm9 = vcmp.eq.s32.totalorder %v1106_v21, %v1004_v13  ;;  %vm70_vm14 = vcmp.eq.s32.totalorder %v1184_v27, %v977_v4 }
  0x21   :  { %868 = vmatpush.msk.msra.mxu3 %vm320_vm1, %v942_v14  ;;  %vm277_vm4 = vmor %vm81_vm12, %vm181_vm13  ;;  %vm226_vm12 = vcmp.eq.s32.totalorder %v1114_v22, %v1004_v13  ;;  %vm118_vm1 = vcmp.eq.s32.totalorder %v1192_v28, %v977_v4 }
  0x22   :  { %818 = vmatpush.msk.msra.mxu0 %vm277_vm4, %v942_v14  ;;  %vm325_vm7 = vmor %vm129_vm15, %vm229_vm0  ;;  %vm170_vm15 = vcmp.eq.s32.totalorder %v1184_v27, %v980_v5  ;;  %vm75_vm4 = vcmp.eq.s32.totalorder %v1132_v23, %v1001_v12 }
  0x23   :  { %834 = vmatpush.msk.msra.mxu1 %vm325_vm7, %v942_v14  ;;  %vm269_vm10 = vmor %vm73_vm2, %vm173_vm3  ;;  %vm218_vm2 = vcmp.eq.s32.totalorder %v1192_v28, %v980_v5  ;;  %vm123_vm7 = vcmp.eq.s32.totalorder %v1140_v24, %v1001_v12 }
  0x24   :  { %853 = vmatpush.msk.msra.mxu2 %vm269_vm10, %v942_v14  ;;  %vm317_vm13 = vmor %vm121_vm5, %vm221_vm6  ;;  %vm175_vm5 = vcmp.eq.s32.totalorder %v1132_v23, %v1004_v13  ;;  %vm67_vm10 = vcmp.eq.s32.totalorder %v1210_v29, %v977_v4 }
  0x25   :  { %869 = vmatpush.msk.msra.mxu3 %vm317_vm13, %v942_v14  ;;  %vm274_vm0 = vmor %vm78_vm8, %vm178_vm9  ;;  %vm223_vm8 = vcmp.eq.s32.totalorder %v1140_v24, %v1004_v13  ;;  %vm115_vm13 = vcmp.eq.s32.totalorder %v1218_v30, %v977_v4 }
  0x26   :  { %819 = vmatpush.msk.msra.mxu0 %vm274_vm0, %v942_v14  ;;  %vm322_vm3 = vmor %vm126_vm11, %vm226_vm12  ;;  %vm167_vm11 = vcmp.eq.s32.totalorder %v1210_v29, %v980_v5  ;;  %vm72_vm0 = vcmp.eq.s32.totalorder %v1158_v25, %v1001_v12 }
  0x27   :  { %835 = vmatpush.msk.msra.mxu1 %vm322_vm3, %v942_v14  ;;  %vm266_vm6 = vmor %vm70_vm14, %vm170_vm15  ;;  %vm215_vm14 = vcmp.eq.s32.totalorder %v1218_v30, %v980_v5  ;;  %vm120_vm3 = vcmp.eq.s32.totalorder %v1166_v26, %v1001_v12 }
  0x28   :  { %854 = vmatpush.msk.msra.mxu2 %vm266_vm6, %v942_v14  ;;  %vm314_vm9 = vmor %vm118_vm1, %vm218_vm2  ;;  %vm172_vm1 = vcmp.eq.s32.totalorder %v1158_v25, %v1004_v13  ;;  %vm64_vm6 = vcmp.eq.s32.totalorder %v1236_v31, %v977_v4 }
  0x29   :  { %870 = vmatpush.msk.msra.mxu3 %vm314_vm9, %v942_v14  ;;  %vm271_vm12 = vmor %vm75_vm4, %vm175_vm5  ;;  %vm220_vm4 = vcmp.eq.s32.totalorder %v1166_v26, %v1004_v13  ;;  %vm112_vm9 = vcmp.eq.s32.totalorder %v1244_v32, %v977_v4 }
  0x2a   :  { %820 = vmatpush.msk.msra.mxu0 %vm271_vm12, %v942_v14  ;;  %vm319_vm15 = vmor %vm123_vm7, %vm223_vm8  ;;  %vm164_vm7 = vcmp.eq.s32.totalorder %v1236_v31, %v980_v5  ;;  %vm69_vm12 = vcmp.eq.s32.totalorder %v1184_v27, %v1001_v12 }
  0x2b   :  { %836 = vmatpush.msk.msra.mxu1 %vm319_vm15, %v942_v14  ;;  %vm263_vm2 = vmor %vm67_vm10, %vm167_vm11  ;;  %vm212_vm10 = vcmp.eq.s32.totalorder %v1244_v32, %v980_v5  ;;  %vm117_vm15 = vcmp.eq.s32.totalorder %v1192_v28, %v1001_v12 }
  0x2c   :  { %855 = vmatpush.msk.msra.mxu2 %vm263_vm2, %v942_v14  ;;  %vm311_vm5 = vmor %vm115_vm13, %vm215_vm14  ;;  %vm169_vm13 = vcmp.eq.s32.totalorder %v1184_v27, %v1004_v13  ;;  %vm61_vm2 = vcmp.eq.s32.totalorder %v1262_v33, %v977_v4 }
  0x2d   :  { %871 = vmatpush.msk.msra.mxu3 %vm311_vm5, %v942_v14  ;;  %vm268_vm8 = vmor %vm72_vm0, %vm172_vm1  ;;  %vm217_vm0 = vcmp.eq.s32.totalorder %v1192_v28, %v1004_v13  ;;  %vm109_vm5 = vcmp.eq.s32.totalorder %v1270_v34, %v977_v4 }
  0x2e   :  { %821 = vmatpush.msk.msra.mxu0 %vm268_vm8, %v942_v14  ;;  %vm316_vm11 = vmor %vm120_vm3, %vm220_vm4  ;;  %vm161_vm3 = vcmp.eq.s32.totalorder %v1262_v33, %v980_v5  ;;  %vm66_vm8 = vcmp.eq.s32.totalorder %v1210_v29, %v1001_v12 }
  0x2f   :  { %837 = vmatpush.msk.msra.mxu1 %vm316_vm11, %v942_v14  ;;  %vm260_vm14 = vmor %vm64_vm6, %vm164_vm7  ;;  %vm209_vm6 = vcmp.eq.s32.totalorder %v1270_v34, %v980_v5  ;;  %vm114_vm11 = vcmp.eq.s32.totalorder %v1218_v30, %v1001_v12 }
  0x30   :  { %856 = vmatpush.msk.msra.mxu2 %vm260_vm14, %v942_v14  ;;  %vm308_vm1 = vmor %vm112_vm9, %vm212_vm10  ;;  %vm166_vm9 = vcmp.eq.s32.totalorder %v1210_v29, %v1004_v13  ;;  %vm58_vm14 = vcmp.eq.s32.totalorder %v1288_v35, %v977_v4 }
  0x31   :  { %872 = vmatpush.msk.msra.mxu3 %vm308_vm1, %v942_v14  ;;  %vm265_vm4 = vmor %vm69_vm12, %vm169_vm13  ;;  %vm214_vm12 = vcmp.eq.s32.totalorder %v1218_v30, %v1004_v13  ;;  %vm106_vm1 = vcmp.eq.s32.totalorder %v1296_v36, %v977_v4 }
  0x32   :  { %822 = vmatpush.msk.msra.mxu0 %vm265_vm4, %v942_v14  ;;  %vm313_vm7 = vmor %vm117_vm15, %vm217_vm0  ;;  %vm158_vm15 = vcmp.eq.s32.totalorder %v1288_v35, %v980_v5  ;;  %vm63_vm4 = vcmp.eq.s32.totalorder %v1236_v31, %v1001_v12 }
  0x33   :  { %838 = vmatpush.msk.msra.mxu1 %vm313_vm7, %v942_v14  ;;  %vm257_vm10 = vmor %vm61_vm2, %vm161_vm3  ;;  %vm206_vm2 = vcmp.eq.s32.totalorder %v1296_v36, %v980_v5  ;;  %vm111_vm7 = vcmp.eq.s32.totalorder %v1244_v32, %v1001_v12 }
  0x34   :  { %857 = vmatpush.msk.msra.mxu2 %vm257_vm10, %v942_v14  ;;  %vm305_vm13 = vmor %vm109_vm5, %vm209_vm6  ;;  %vm163_vm5 = vcmp.eq.s32.totalorder %v1236_v31, %v1004_v13  ;;  %vm55_vm10 = vcmp.eq.s32.totalorder %v1314_v37, %v977_v4 }
  0x35   :  { %873 = vmatpush.msk.msra.mxu3 %vm305_vm13, %v942_v14  ;;  %vm262_vm0 = vmor %vm66_vm8, %vm166_vm9  ;;  %vm211_vm8 = vcmp.eq.s32.totalorder %v1244_v32, %v1004_v13  ;;  %vm103_vm13 = vcmp.eq.s32.totalorder %v1322_v38, %v977_v4 }
  0x36   :  { %823 = vmatpush.msk.msra.mxu0 %vm262_vm0, %v942_v14  ;;  %vm310_vm3 = vmor %vm114_vm11, %vm214_vm12  ;;  %vm155_vm11 = vcmp.eq.s32.totalorder %v1314_v37, %v980_v5  ;;  %vm60_vm0 = vcmp.eq.s32.totalorder %v1262_v33, %v1001_v12 }
  0x37   :  { %839 = vmatpush.msk.msra.mxu1 %vm310_vm3, %v942_v14  ;;  %vm254_vm6 = vmor %vm58_vm14, %vm158_vm15  ;;  %vm203_vm14 = vcmp.eq.s32.totalorder %v1322_v38, %v980_v5  ;;  %vm108_vm3 = vcmp.eq.s32.totalorder %v1270_v34, %v1001_v12 }
  0x38   :  { %858 = vmatpush.msk.msra.mxu2 %vm254_vm6, %v942_v14  ;;  %vm302_vm9 = vmor %vm106_vm1, %vm206_vm2  ;;  %vm160_vm1 = vcmp.eq.s32.totalorder %v1262_v33, %v1004_v13  ;;  %vm52_vm6 = vcmp.eq.s32.totalorder %v974_v3, %v977_v4 }
  0x39   :  { %874 = vmatpush.msk.msra.mxu3 %vm302_vm9, %v942_v14  ;;  %vm259_vm12 = vmor %vm63_vm4, %vm163_vm5  ;;  %vm208_vm4 = vcmp.eq.s32.totalorder %v1270_v34, %v1004_v13  ;;  %vm100_vm9 = vcmp.eq.s32.totalorder %v1345_v39, %v977_v4  ;;  %v1936_v4 = vmov 0 }
  0x3a   :  { %824 = vmatpush.msk.msra.mxu0 %vm259_vm12, %v942_v14  ;;  %vm307_vm15 = vmor %vm111_vm7, %vm211_vm8  ;;  %vm152_vm7 = vcmp.eq.s32.totalorder %v974_v3, %v980_v5  ;;  %vm98_vm12 = vcmp.eq.s32.totalorder %v983_v6, %v1353_v40 }
  0x3b   :  { %840 = vmatpush.msk.msra.mxu1 %vm307_vm15, %v942_v14  ;;  %vm251_vm2 = vmor %vm55_vm10, %vm155_vm11  ;;  %vm200_vm10 = vcmp.eq.s32.totalorder %v1345_v39, %v980_v5  ;;  %vm146_vm15 = vcmp.eq.s32.totalorder %v986_v7, %v1353_v40 }
  0x3c   :  { %859 = vmatpush.msk.msra.mxu2 %vm251_vm2, %v942_v14  ;;  %vm299_vm5 = vmor %vm103_vm13, %vm203_vm14  ;;  %vm198_vm13 = vcmp.eq.s32.totalorder %v983_v6, %v1356_v41  ;;  %vm57_vm2 = vcmp.eq.s32.totalorder %v1288_v35, %v1001_v12 }
  0x3d   :  { %875 = vmatpush.msk.msra.mxu3 %vm299_vm5, %v942_v14  ;;  %vm256_vm8 = vmor %vm60_vm0, %vm160_vm1  ;;  %vm246_vm0 = vcmp.eq.s32.totalorder %v986_v7, %v1356_v41  ;;  %vm105_vm5 = vcmp.eq.s32.totalorder %v1296_v36, %v1001_v12  ;;  %v1943_v7 = vmov 0 }
  0x3e   :  { %825 = vmatpush.msk.msra.mxu0 %vm256_vm8, %v942_v14  ;;  %vm304_vm11 = vmor %vm108_vm3, %vm208_vm4  ;;  %vm157_vm3 = vcmp.eq.s32.totalorder %v1288_v35, %v1004_v13  ;;  %vm95_vm8 = vcmp.eq.s32.totalorder %v989_v8, %v1353_v40 }
  0x3f   :  { %841 = vmatpush.msk.msra.mxu1 %vm304_vm11, %v942_v14  ;;  %vm248_vm14 = vmor %vm52_vm6, %vm152_vm7  ;;  %vm205_vm6 = vcmp.eq.s32.totalorder %v1296_v36, %v1004_v13  ;;  %vm143_vm11 = vcmp.eq.s32.totalorder %v992_v9, %v1353_v40 }
  0x40   :  { %860 = vmatpush.msk.msra.mxu2 %vm248_vm14, %v942_v14  ;;  %vm296_vm1 = vmor %vm100_vm9, %vm200_vm10  ;;  %vm195_vm9 = vcmp.eq.s32.totalorder %v989_v8, %v1356_v41  ;;  %vm54_vm14 = vcmp.eq.s32.totalorder %v1314_v37, %v1001_v12  ;;  %v1946_v8 = vmov 0 }
  0x41   :  { %876 = vmatpush.msk.msra.mxu3 %vm296_vm1, %v942_v14  ;;  %601 = vmatmul.f32.vlgmr.msra.gmra.mxu2 %v1380_v42  ;;  %vm1403_vm4 = vmor %vm98_vm12, %vm198_vm13  ;;  %vm243_vm12 = vcmp.eq.s32.totalorder %v992_v9, %v1356_v41  ;;  %vm102_vm1 = vcmp.eq.s32.totalorder %v1322_v38, %v1001_v12 }
  0x42   :  { %624 = vmatmul.f32.vlgmr.msra.gmra.mxu3 %v1390_v43  ;;  %909 = vmatpush.msk.msrb.mxu2 %vm1403_vm4, %v942_v14  ;;  %vm1415_vm7 = vmor %vm146_vm15, %vm246_vm0  ;;  %vm154_vm15 = vcmp.eq.s32.totalorder %v1314_v37, %v1004_v13 }
  0x43   :  { %925 = vmatpush.msk.msrb.mxu3 %vm1415_vm7, %v942_v14  ;;  %vm253_vm10 = vmor %vm57_vm2, %vm157_vm3  ;;  %vm202_vm2 = vcmp.eq.s32.totalorder %v1322_v38, %v1004_v13 }
  0x44   :  { %826 = vmatpush.msk.msra.mxu0 %vm253_vm10, %v942_v14  ;;  %vm301_vm13 = vmor %vm105_vm5, %vm205_vm6  ;;  %vm92_vm5 = vcmp.eq.s32.totalorder %v995_v10, %v1353_v40  ;;  %vm192_vm6 = vcmp.eq.s32.totalorder %v995_v10, %v1356_v41  ;;  %vm240_vm10 = vcmp.eq.s32.totalorder %v998_v11, %v1356_v41 }
  0x45   :  { %842 = vmatpush.msk.msra.mxu1 %vm301_vm13, %v942_v14  ;;  %vm1436_vm0 = vmor %vm95_vm8, %vm195_vm9  ;;  %vm140_vm9 = vcmp.eq.s32.totalorder %v998_v11, %v1353_v40  ;;  %vm151_vm13 = vcmp.eq.s32.totalorder %v974_v3, %v1004_v13 }
  0x46   :  { %910 = vmatpush.msk.msrb.mxu2 %vm1436_vm0, %v942_v14  ;;  %vm1447_vm3 = vmor %vm143_vm11, %vm243_vm12  ;;  %vm51_vm12 = vcmp.eq.s32.totalorder %v974_v3, %v1001_v12 }
  0x47   :  { %v1899_v47 = vsel %vm1447_vm3, 4294967295, %v1898_v47  ;;  %926 = vmatpush.msk.msrb.mxu3 %vm1447_vm3, %v942_v14  ;;  %vm250_vm8 = vmor %vm54_vm14, %vm154_vm15  ;;  %vm99_vm15 = vcmp.eq.s32.totalorder %v1345_v39, %v1001_v12  ;;  %vm199_vm3 = vcmp.eq.s32.totalorder %v1345_v39, %v1004_v13 }
  0x48   :  { %827 = vmatpush.msk.msra.mxu0 %vm250_vm8, %v942_v14  ;;  %vm298_vm11 = vmor %vm102_vm1, %vm202_vm2  ;;  %vm89_vm2 = vcmp.eq.s32.totalorder %v1028_v15, %v1353_v40  ;;  %vm137_vm8 = vcmp.eq.s32.totalorder %v1036_v16, %v1353_v40 }
  0x49   :  { %843 = vmatpush.msk.msra.mxu1 %vm298_vm11, %v942_v14  ;;  %vm1478_vm14 = vmor %vm92_vm5, %vm192_vm6  ;;  %604 = vmatmul.f32.gmra.mxu2 %v1458_v48  ;;  %vm189_vm5 = vcmp.eq.s32.totalorder %v1028_v15, %v1356_v41  ;;  %vm86_vm11 = vcmp.eq.s32.totalorder %v1054_v17, %v1353_v40 }
  0x4a   :  { %v1901_v50 = vsel %vm1478_vm14, 4294967295, %v1900_v50  ;;  %911 = vmatpush.msk.msrb.mxu2 %vm1478_vm14, %v942_v14  ;;  %vm1490_vm1 = vmor %vm140_vm9, %vm240_vm10  ;;  %627 = vmatmul.f32.gmra.mxu3 %v1470_v49  ;;  %vm237_vm9 = vcmp.eq.s32.totalorder %v1036_v16, %v1356_v41  ;;  %vm186_vm14 = vcmp.eq.s32.totalorder %v1054_v17, %v1356_v41 }
  0x4b   :  { %927 = vmatpush.msk.msrb.mxu3 %vm1490_vm1, %v942_v14  ;;  %vm247_vm6 = vmor %vm51_vm12, %vm151_vm13  ;;  %vm134_vm13 = vcmp.eq.s32.totalorder %v1062_v18, %v1353_v40 }
  0x4c   :  { %828 = vmatpush.msk.msra.mxu0 %vm247_vm6, %v942_v14  ;;  %vm295_vm10 = vmor %vm99_vm15, %vm199_vm3  ;;  %vm234_vm3 = vcmp.eq.s32.totalorder %v1062_v18, %v1356_v41  ;;  %vm231_vm6 = vcmp.eq.s32.totalorder %v1088_v20, %v1356_v41 }
  0x4d   :  { %844 = vmatpush.msk.msra.mxu1 %vm295_vm10, %v942_v14  ;;  %vm1515_vm12 = vmor %vm89_vm2, %vm189_vm5  ;;  %vm183_vm2 = vcmp.eq.s32.totalorder %v1080_v19, %v1356_v41  ;;  %555 = vmatmul.f32.vlgmr.msra.gmra.mxu0 %v1380_v42  ;;  %vm1912_vm10 = vnez %v1899_v47 }
  0x4e   :  { %877 = vmatpush.msk.msrb.mxu0 %vm1403_vm4, %v942_v14  ;;  %912 = vmatpush.msk.msrb.mxu2 %vm1515_vm12, %v942_v14  ;;  %vm1529_vm15 = vmor %vm137_vm8, %vm237_vm9  ;;  %vm83_vm4 = vcmp.eq.s32.totalorder %v1080_v19, %v1353_v40  ;;  %vm180_vm9 = vcmp.eq.s32.totalorder %v1106_v21, %v1356_v41 }
  0x4f   :  { %893 = vmatpush.msk.msrb.mxu1 %vm1415_vm7, %v942_v14  ;;  %928 = vmatpush.msk.msrb.mxu3 %vm1529_vm15, %v942_v14  ;;  %vm1541_vm5 = vmor %vm86_vm11, %vm186_vm14  ;;  %vm131_vm7 = vcmp.eq.s32.totalorder %v1088_v20, %v1353_v40  ;;  %vm80_vm14 = vcmp.eq.s32.totalorder %v1106_v21, %v1353_v40 }
  0x50   :  { %v1909_v54 = vsel %vm1541_vm5, 4294967295, %v1908_v54  ;;  %578 = vmatmul.f32.vlgmr.msra.gmra.mxu1 %v1390_v43  ;;  %878 = vmatpush.msk.msrb.mxu0 %vm1436_vm0, %v942_v14  ;;  %vm1553_vm8 = vmor %vm134_vm13, %vm234_vm3  ;;  %vm128_vm0 = vcmp.eq.s32.totalorder %v1114_v22, %v1353_v40  ;;  %vm228_vm13 = vcmp.eq.s32.totalorder %v1114_v22, %v1356_v41  ;;  %vm1915_vm3 = vnez %v1901_v50 }
  0x51   :  { %913 = vmatpush.msk.msrb.mxu2 %vm1541_vm5, %v942_v14  ;;  %894 = vmatpush.msk.msrb.mxu1 %vm1912_vm10, %v942_v14  ;;  %vm1567_vm11 = vmor %vm83_vm4, %vm183_vm2  ;;  %vm77_vm4 = vcmp.eq.s32.totalorder %v1132_v23, %v1353_v40  ;;  %vm177_vm2 = vcmp.eq.s32.totalorder %v1132_v23, %v1356_v41 }
  0x52   :  { %929 = vmatpush.msk.msrb.mxu3 %vm1553_vm8, %v942_v14  ;;  %879 = vmatpush.msk.msrb.mxu0 %vm1915_vm3, %v942_v14  ;;  %vm1581_vm5 = vmor %vm131_vm7, %vm231_vm6  ;;  %vm125_vm7 = vcmp.eq.s32.totalorder %v1140_v24, %v1353_v40  ;;  %vm225_vm6 = vcmp.eq.s32.totalorder %v1140_v24, %v1356_v41 }
  0x53   :  { %914 = vmatpush.msk.msrb.mxu2 %vm1567_vm11, %v942_v14  ;;  %895 = vmatpush.msk.msrb.mxu1 %vm1490_vm1, %v942_v14  ;;  %vm1595_vm10 = vmor %vm80_vm14, %vm180_vm9  ;;  %vm74_vm1 = vcmp.eq.s32.totalorder %v1158_v25, %v1353_v40  ;;  %vm174_vm14 = vcmp.eq.s32.totalorder %v1158_v25, %v1356_v41 }
  0x54   :  { %v1919_v58 = vsel %vm1595_vm10, 4294967295, %v1918_v58  ;;  %930 = vmatpush.msk.msrb.mxu3 %vm1581_vm5, %v942_v14  ;;  %880 = vmatpush.msk.msrb.mxu0 %vm1515_vm12, %v942_v14  ;;  %vm1609_vm3 = vmor %vm128_vm0, %vm228_vm13  ;;  %vm122_vm12 = vcmp.eq.s32.totalorder %v1166_v26, %v1353_v40  ;;  %vm222_vm0 = vcmp.eq.s32.totalorder %v1166_v26, %v1356_v41  ;;  %vm1924_vm13 = vnez %v1909_v54 }
  0x55   :  { %915 = vmatpush.msk.msrb.mxu2 %vm1595_vm10, %v942_v14  ;;  %896 = vmatpush.msk.msrb.mxu1 %vm1529_vm15, %v942_v14  ;;  %vm1623_vm9 = vmor %vm77_vm4, %vm177_vm2  ;;  %vm71_vm15 = vcmp.eq.s32.totalorder %v1184_v27, %v1353_v40  ;;  %vm171_vm4 = vcmp.eq.s32.totalorder %v1184_v27, %v1356_v41 }
  0x56   :  { %931 = vmatpush.msk.msrb.mxu3 %vm1609_vm3, %v942_v14  ;;  %881 = vmatpush.msk.msrb.mxu0 %vm1924_vm13, %v942_v14  ;;  %vm1637_vm10 = vmor %vm125_vm7, %vm225_vm6  ;;  %vm119_vm7 = vcmp.eq.s32.totalorder %v1192_v28, %v1353_v40  ;;  %vm219_vm6 = vcmp.eq.s32.totalorder %v1192_v28, %v1356_v41 }
  0x57   :  { %v1926_v61 = vsel %vm1637_vm10, 4294967295, %v1925_v61  ;;  %916 = vmatpush.msk.msrb.mxu2 %vm1623_vm9, %v942_v14  ;;  %897 = vmatpush.msk.msrb.mxu1 %vm1553_vm8, %v942_v14  ;;  %vm1651_vm2 = vmor %vm74_vm1, %vm174_vm14  ;;  %vm68_vm8 = vcmp.eq.s32.totalorder %v1210_v29, %v1353_v40  ;;  %vm168_vm1 = vcmp.eq.s32.totalorder %v1210_v29, %v1356_v41 }
  0x58   :  { %v1928_v62 = vsel %vm1651_vm2, 4294967295, %v1927_v62  ;;  %932 = vmatpush.msk.msrb.mxu3 %vm1637_vm10, %v942_v14  ;;  %558 = vmatmul.f32.gmra.mxu0 %v1458_v48  ;;  %vm1663_vm13 = vmor %vm122_vm12, %vm222_vm0  ;;  %vm116_vm12 = vcmp.eq.s32.totalorder %v1218_v30, %v1353_v40  ;;  %vm216_vm0 = vcmp.eq.s32.totalorder %v1218_v30, %v1356_v41 }
  0x59   :  { %581 = vmatmul.f32.gmra.mxu1 %v1470_v49  ;;  %882 = vmatpush.msk.msrb.mxu0 %vm1567_vm11, %v942_v14  ;;  %vm1675_vm14 = vmor %vm71_vm15, %vm171_vm4  ;;  %vm65_vm11 = vcmp.eq.s32.totalorder %v1236_v31, %v1353_v40  ;;  %vm165_vm15 = vcmp.eq.s32.totalorder %v1236_v31, %v1356_v41  ;;  %vm1935_vm4 = vnez %v1919_v58 }
  0x5a   :  { %917 = vmatpush.msk.msrb.mxu2 %vm1651_vm2, %v942_v14  ;;  %898 = vmatpush.msk.msrb.mxu1 %vm1581_vm5, %v942_v14  ;;  %vm1689_vm10 = vmor %vm119_vm7, %vm219_vm6  ;;  %vm113_vm5 = vcmp.eq.s32.totalorder %v1244_v32, %v1353_v40  ;;  %vm213_vm7 = vcmp.eq.s32.totalorder %v1244_v32, %v1356_v41 }
  0x5b   :  { %v1934_v2 = vsel %vm1689_vm10, 4294967295, %v1933_v2  ;;  %933 = vmatpush.msk.msrb.mxu3 %vm1663_vm13, %v942_v14  ;;  %883 = vmatpush.msk.msrb.mxu0 %vm1935_vm4, %v942_v14  ;;  %vm1703_vm2 = vmor %vm68_vm8, %vm168_vm1  ;;  %vm62_vm8 = vcmp.eq.s32.totalorder %v1262_v33, %v1353_v40  ;;  %vm162_vm1 = vcmp.eq.s32.totalorder %v1262_v33, %v1356_v41 }
  0x5c   :  { %v1937_v4 = vsel %vm1703_vm2, 4294967295, %v1936_v4  ;;  %918 = vmatpush.msk.msrb.mxu2 %vm1675_vm14, %v942_v14  ;;  %899 = vmatpush.msk.msrb.mxu1 %vm1609_vm3, %v942_v14  ;;  %vm1717_vm6 = vmor %vm116_vm12, %vm216_vm0  ;;  %vm110_vm3 = vcmp.eq.s32.totalorder %v1270_v34, %v1353_v40  ;;  %vm210_vm12 = vcmp.eq.s32.totalorder %v1270_v34, %v1356_v41  ;;  %vm1942_vm0 = vnez %v1926_v61 }
  0x5d   :  { %934 = vmatpush.msk.msrb.mxu3 %vm1689_vm10, %v942_v14  ;;  %884 = vmatpush.msk.msrb.mxu0 %vm1623_vm9, %v942_v14  ;;  %vm1731_vm4 = vmor %vm65_vm11, %vm165_vm15  ;;  %vm59_vm9 = vcmp.eq.s32.totalorder %v1288_v35, %v1353_v40  ;;  %vm159_vm11 = vcmp.eq.s32.totalorder %v1288_v35, %v1356_v41  ;;  %vm1945_vm15 = vnez %v1928_v62 }
  0x5e   :  { %919 = vmatpush.msk.msrb.mxu2 %vm1703_vm2, %v942_v14  ;;  %900 = vmatpush.msk.msrb.mxu1 %vm1942_vm0, %v942_v14  ;;  %vm1745_vm10 = vmor %vm113_vm5, %vm213_vm7  ;;  %vm107_vm5 = vcmp.eq.s32.totalorder %v1296_v36, %v1353_v40  ;;  %vm207_vm7 = vcmp.eq.s32.totalorder %v1296_v36, %v1356_v41 }
  0x5f   :  { %v1944_v7 = vsel %vm1745_vm10, 4294967295, %v1943_v7  ;;  %935 = vmatpush.msk.msrb.mxu3 %vm1717_vm6, %v942_v14  ;;  %885 = vmatpush.msk.msrb.mxu0 %vm1945_vm15, %v942_v14  ;;  %vm1759_vm2 = vmor %vm62_vm8, %vm162_vm1  ;;  %vm56_vm8 = vcmp.eq.s32.totalorder %v1314_v37, %v1353_v40  ;;  %vm156_vm1 = vcmp.eq.s32.totalorder %v1314_v37, %v1356_v41 }
  0x60   :  { %v1947_v8 = vsel %vm1759_vm2, 4294967295, %v1946_v8  ;;  %920 = vmatpush.msk.msrb.mxu2 %vm1731_vm4, %v942_v14  ;;  %901 = vmatpush.msk.msrb.mxu1 %vm1663_vm13, %v942_v14  ;;  %vm1773_vm0 = vmor %vm110_vm3, %vm210_vm12  ;;  %vm104_vm13 = vcmp.eq.s32.totalorder %v1322_v38, %v1353_v40  ;;  %vm204_vm3 = vcmp.eq.s32.totalorder %v1322_v38, %v1356_v41  ;;  %vm1952_vm12 = vnez %v1934_v2 }
  0x61   :  { %936 = vmatpush.msk.msrb.mxu3 %vm1745_vm10, %v942_v14  ;;  %886 = vmatpush.msk.msrb.mxu0 %vm1675_vm14, %v942_v14  ;;  %vm1787_vm15 = vmor %vm59_vm9, %vm159_vm11  ;;  %vm53_vm14 = vcmp.eq.s32.totalorder %v974_v3, %v1353_v40  ;;  %vm153_vm9 = vcmp.eq.s32.totalorder %v974_v3, %v1356_v41  ;;  %vm1955_vm11 = vnez %v1937_v4 }
  0x62   :  { %921 = vmatpush.msk.msrb.mxu2 %vm1759_vm2, %v942_v14  ;;  %902 = vmatpush.msk.msrb.mxu1 %vm1952_vm12, %v942_v14  ;;  %vm1801_vm10 = vmor %vm107_vm5, %vm207_vm7  ;;  %vm101_vm5 = vcmp.eq.s32.totalorder %v1345_v39, %v1353_v40  ;;  %vm201_vm7 = vcmp.eq.s32.totalorder %v1345_v39, %v1356_v41 }
  0x63   :  { %937 = vmatpush.msk.msrb.mxu3 %vm1773_vm0, %v942_v14  ;;  %887 = vmatpush.msk.msrb.mxu0 %vm1955_vm11, %v942_v14  ;;  %vm1815_vm2 = vmor %vm56_vm8, %vm156_vm1 }
  0x64   :  { %922 = vmatpush.msk.msrb.mxu2 %vm1787_vm15, %v942_v14  ;;  %903 = vmatpush.msk.msrb.mxu1 %vm1717_vm6, %v942_v14  ;;  %vm1829_vm12 = vmor %vm104_vm13, %vm204_vm3  ;;  %vm1960_vm6 = vnez %v1944_v7  ;;  %vm1961_vm13 = vnez %v1947_v8 }
  0x65   :  { %938 = vmatpush.msk.msrb.mxu3 %vm1801_vm10, %v942_v14  ;;  %888 = vmatpush.msk.msrb.mxu0 %vm1731_vm4, %v942_v14  ;;  %vm249_vm8 = vmor %vm53_vm14, %vm153_vm9  ;;  %vm710_vm4 = vcmp.lt.s32.totalorder %v14_v0, 384 }
  0x66   :  { %923 = vmatpush.msk.msrb.mxu2 %vm1815_vm2, %v942_v14  ;;  %904 = vmatpush.msk.msrb.mxu1 %vm1960_vm6, %v942_v14  ;;  %vm297_vm1 = vmor %vm101_vm5, %vm201_vm7 }
  0x67   :  { %939 = vmatpush.msk.msrb.mxu3 %vm1829_vm12, %v942_v14  ;;  %889 = vmatpush.msk.msrb.mxu0 %vm1961_vm13, %v942_v14 }
  0x68   :  { %924 = vmatpush.msk.msrb.mxu2 %vm249_vm8, %v942_v14  ;;  %905 = vmatpush.msk.msrb.mxu1 %vm1773_vm0, %v942_v14 }
  0x69   :  { %940 = vmatpush.msk.msrb.mxu3 %vm297_vm1, %v942_v14  ;;  %650 = vmatmul.f32.vlgmr.msrb.gmra.mxu2 %v1458_v48 }
  0x6a   :  { %673 = vmatmul.f32.vlgmr.msrb.gmra.mxu3 %v1470_v49  ;;  %890 = vmatpush.msk.msrb.mxu0 %vm1787_vm15, %v942_v14 }
  0x6b   :  { %906 = vmatpush.msk.msrb.mxu1 %vm1801_vm10, %v942_v14  ;;  %vm703_vm10 = vcmask 1040384  }
  0x6c   :  { %891 = vmatpush.msk.msrb.mxu0 %vm1815_vm2, %v942_v14  ;;  %vm705_vm2 = vcmask 1041408  }
  0x6d   :  { %907 = vmatpush.msk.msrb.mxu1 %vm1829_vm12, %v942_v14 }
  0x6e   :  { %892 = vmatpush.msk.msrb.mxu0 %vm249_vm8, %v942_v14 }
  0x6f   :  { %908 = vmatpush.msk.msrb.mxu1 %vm297_vm1, %v942_v14  ;;  %647 = vmatmul.f32.vlgmr.msrb.gmra.mxu0 %v1380_v42 }
  0x70   :  { %670 = vmatmul.f32.vlgmr.msrb.gmra.mxu1 %v1390_v43 }
  0xc4   :  { %v602_v13 = vpop.f32.mrf.mxu2 }
  0xc5   :  { %v625_v15 = vpop.f32.mrf.mxu3 }
  0xc6   :  { %v626_v20 = vadd.f32 %v625_v15, %v602_v13 }
  0xca   :  { %v556_v16 = vpop.f32.mrf.mxu0 }
  0xcc   :  { %v605_v18 = vpop.f32.mrf.mxu2 }
  0xcd   :  { %v579_v17 = vpop.f32.mrf.mxu1  ;;  %v628_v19 = vpop.f32.mrf.mxu3 }
  0xce   :  { %v629_v21 = vadd.f32 %v628_v19, %v605_v18  ;;  %v580_v24 = vadd.f32 %v579_v17, %v556_v16 }
  0xd0   :  { %v678_v25 = vmul.f32 %v629_v21, %v626_v20 }
  0xd2   :  { %v686_v27 = vrot.slane %v678_v25, 4 }
  0xd4   :  { %v687_v14 = vadd.f32 %v686_v27, %v678_v25 }
  0xd5   :  { %v559_v22 = vpop.f32.mrf.mxu0 }
  0xd6   :  { %v582_v23 = vpop.f32.mrf.mxu1  ;;  %v688_v30 = vrot.slane %v687_v14, 2 }
  0xd7   :  { %v583_v26 = vadd.f32 %v582_v23, %v559_v22 }
  0xd8   :  { %v689_v38 = vadd.f32 %v688_v30, %v687_v14 }
  0xd9   :  { %v677_v28 = vmul.f32 %v583_v26, %v580_v24 }
  0xda   :  { %v690_v42 = vrot.slane %v689_v38, 1 }
  0xdb   :  { %v680_v29 = vrot.slane %v677_v28, 4 }
  0xdc   :  { %v691_v46 = vadd.f32 %v690_v42, %v689_v38 }
  0xdd   :  { %v681_v31 = vadd.f32 %v680_v29, %v677_v28 }
  0xde   :  { %v701_v50 = vrot.slane %v691_v46, 7 }
  0xdf   :  { %v682_v39 = vrot.slane %v681_v31, 2 }
  0xe1   :  { %v683_v43 = vadd.f32 %v682_v39, %v681_v31 }
  0xe3   :  { %v684_v47 = vrot.slane %v683_v43, 1 }
  0xe5   :  { %v685_v51 = vadd.f32 %v684_v47, %v683_v43 }
  0xe7   :  { %v704_v54 = vsel %vm703_vm10, %v685_v51, %v701_v50 }
  0xec   :  { %v648_v32 = vpop.f32.mrf.mxu0  ;;  %v651_v33 = vpop.f32.mrf.mxu2 }
  0xed   :  { %v671_v34 = vpop.f32.mrf.mxu1  ;;  %v674_v35 = vpop.f32.mrf.mxu3 }
  0xee   :  { %v672_v36 = vadd.f32 %v671_v34, %v648_v32  ;;  %v675_v37 = vadd.f32 %v674_v35, %v651_v33 }
  0xf0   :  { %v679_v40 = vmul.f32 %v675_v37, %v672_v36 }
  0xf2   :  { %v692_v41 = vrot.slane %v679_v40, 4 }
  0xf4   :  { %v693_v44 = vadd.f32 %v692_v41, %v679_v40 }
  0xf6   :  { %v694_v45 = vrot.slane %v693_v44, 2 }
  0xf8   :  { %v695_v48 = vadd.f32 %v694_v45, %v693_v44 }
  0xfa   :  { %v696_v49 = vrot.slane %v695_v48, 1 }
  0xfc   :  { %v697_v52 = vadd.f32 %v696_v49, %v695_v48 }
  0xfe   :  { %v702_v53 = vrot.slane %v697_v52, 6 }
 0x100   :  { %v706_v55 = vsel %vm705_vm2, %v704_v54, %v702_v53 }
 0x101   :  { %712 = vst.msk [vmem:[%s1881_s3] sm:$0x7] %vm710_vm4, %v706_v55 }

</bundles_post_ra>
